<compile_context>
chip_gen: v7x
topology: tpu7x:2x2x1
jax: 0.10.0
libtpu: 0.0.40
codegen_flags: <defaults>
</compile_context>

<pallas_src>
import functools

import jax
import jax.numpy as jnp
from jax.experimental import pallas as pl
from jax.experimental.pallas import tpu as pltpu

IN_FEATURES = 256 + 32          # 288, as in the PyTorch module
N_PAD = 128                     # lane-dense padded action dimension
K_ROWS = IN_FEATURES + 8        # weight rows + bias row, rounded to sublane tile


def _linear_kernel(x_ref, wb_ref, o_ref, *, k):
    # wb_ref holds the weight in rows [0, k) and the bias in row k (rest zero).
    x = x_ref[...]                                   # (TM, K)
    w = wb_ref[:k, :]                                # (K, N_PAD) resident f32
    b = wb_ref[k:k + 1, :]                           # (1, N_PAD) f32
    if x.dtype == jnp.bfloat16:
        w = w.astype(jnp.bfloat16)                   # bf16 MXU operands
    acc = jnp.dot(x, w, preferred_element_type=jnp.float32)   # MXU, f32 acc
    o_ref[...] = (acc + b).astype(o_ref.dtype)


def _round_up(v, m):
    return (v + m - 1) // m * m


@functools.partial(jax.jit, static_argnames=("use_bf16",))
def con_forward(x, weight, bias, use_bf16=False):
    """Pallas equivalent of Con.forward.

    x:      (B, 288) float32
    weight: (288, num_actions) float32  (transposed vs. PyTorch's (out, in))
    bias:   (num_actions,) float32
    returns (B, num_actions) with x's dtype
    """
    B, K = x.shape
    K2, N = weight.shape
    assert K == K2 == IN_FEATURES
    assert bias.shape == (N,)

    # Pack weight + bias into a single lane-dense, sublane-aligned block.
    wb = jnp.zeros((K_ROWS, N_PAD), jnp.float32)
    wb = wb.at[:K, :N].set(weight.astype(jnp.float32))
    wb = wb.at[K, :N].set(bias.astype(jnp.float32))

    # Batch tiling: 8-sublane aligned (16 for bf16 packing); big tiles for big B.
    align = 16 if use_bf16 else 8
    tm = 256 if B >= 256 else _round_up(B, align)
    b_pad = _round_up(B, tm)

    x_p = x.astype(jnp.bfloat16) if use_bf16 else x.astype(jnp.float32)
    if b_pad != B:
        x_p = jnp.pad(x_p, ((0, b_pad - B), (0, 0)))

    out = pl.pallas_call(
        functools.partial(_linear_kernel, k=K),
        out_shape=jax.ShapeDtypeStruct((b_pad, N_PAD), jnp.float32),
        grid=(pl.cdiv(b_pad, tm),),
        in_specs=[
            pl.BlockSpec((tm, K), lambda i: (i, 0)),          # batch-tiled x
            pl.BlockSpec((K_ROWS, N_PAD), lambda i: (0, 0)),  # resident W||b
        ],
        out_specs=pl.BlockSpec((tm, N_PAD), lambda i: (i, 0)),
        compiler_params=pltpu.CompilerParams(
            dimension_semantics=("parallel",)),
    )(x_p, wb)

    return out[:B, :N].astype(x.dtype)


def init_con_params(key, num_of_actions):
    """Deterministic init mimicking nn.Linear default (uniform ±1/sqrt(fan_in))."""
    kw, kb = jax.random.split(key)
    bound = 1.0 / jnp.sqrt(jnp.float32(IN_FEATURES))
    weight = jax.random.uniform(
        kw, (IN_FEATURES, num_of_actions), jnp.float32, -bound, bound)
    bias = jax.random.uniform(
        kb, (num_of_actions,), jnp.float32, -bound, bound)
    return weight, bias


if __name__ == "__main__":
    key = jax.random.PRNGKey(0)
    k_x, k_p = jax.random.split(key)

    batch = 2
    num_of_actions = 4

    x = jax.random.normal(k_x, (batch, IN_FEATURES), jnp.float32)
    weight, bias = init_con_params(k_p, num_of_actions)

    # f32 path.
    q_value = jax.block_until_ready(con_forward(x, weight, bias))
    ref = x @ weight + bias
    assert q_value.shape == (batch, num_of_actions)
    assert jnp.allclose(q_value, ref, atol=1e-5, rtol=1e-5)

    # bf16-operand / f32-accumulate path (v6e/v7x MXU-native); looser tolerance.
    q_bf16 = jax.block_until_ready(con_forward(x, weight, bias, use_bf16=True))
    assert q_bf16.shape == (batch, num_of_actions)
    assert jnp.allclose(q_bf16, ref, atol=3e-2, rtol=3e-2)

    print("KERNEL_OK")
</pallas_src>

<mosaic_0001>
module attributes {stable_mosaic.version = 11 : i64} {
  func.func @_linear_kernel(%arg0: i32, %arg1: memref<8x288xf32, #tpu.memory_space<vmem>>, %arg2: memref<296x128xf32, #tpu.memory_space<vmem>>, %arg3: memref<8x128xf32, #tpu.memory_space<vmem>>) attributes {dimension_semantics = [#tpu.dimension_semantics<parallel>], iteration_bounds = array<i64: 1>, scalar_prefetch = 0 : i64, scratch_operands = 0 : i64, tpu.core_type = #tpu.core_type<tc>, window_params = [{transform_indices = @transform_0, window_bounds = array<i64: 8, 288>}, {pipeline_mode = #tpu.pipeline_mode<synchronous>, transform_indices = @transform_1, window_bounds = array<i64: 296, 128>}, {transform_indices = @transform_2, window_bounds = array<i64: 8, 128>}]} {
    %c0 = arith.constant 0 : index
    %c0_0 = arith.constant 0 : index
    %0 = vector.load %arg1[%c0, %c0_0] : memref<8x288xf32, #tpu.memory_space<vmem>>, vector<8x288xf32>
    %c0_1 = arith.constant 0 : index
    %c0_2 = arith.constant 0 : index
    %1 = vector.load %arg2[%c0_1, %c0_2] : memref<296x128xf32, #tpu.memory_space<vmem>>, vector<288x128xf32>
    %c288 = arith.constant 288 : index
    %c0_3 = arith.constant 0 : index
    %2 = vector.load %arg2[%c288, %c0_3] : memref<296x128xf32, #tpu.memory_space<vmem>>, vector<1x128xf32>
    %cst = arith.constant dense<0.000000e+00> : vector<8x128xf32>
    %3 = tpu.matmul %0, %1, %cst {dimension_numbers = #tpu.dot_dimension_numbers<[1], [0], [0], [1], [0, 0, 1, 1], [], []>} : vector<8x288xf32>, vector<288x128xf32>, vector<8x128xf32> -> vector<8x128xf32>
    %4 = vector.broadcast %2 : vector<1x128xf32> to vector<8x128xf32>
    %5 = arith.addf %3, %4 : vector<8x128xf32>
    %c0_4 = arith.constant 0 : index
    %c0_5 = arith.constant 0 : index
    %6 = vector.load %arg3[%c0_4, %c0_5] : memref<8x128xf32, #tpu.memory_space<vmem>>, vector<8x128xf32>
    tpu.vector_store %arg3[%c0_4, %c0_5], %5 {strides = array<i32>} : memref<8x128xf32, #tpu.memory_space<vmem>>, vector<8x128xf32>,
    return
  }
  func.func @transform_0(%arg0: i32) -> (i32, i32) {
    %c0_i32 = arith.constant 0 : i32
    %c0_i32_0 = arith.constant 0 : i32
    return %arg0, %c0_i32 : i32, i32
  }
  func.func @transform_1(%arg0: i32) -> (i32, i32) {
    %c0_i32 = arith.constant 0 : i32
    %c0_i32_0 = arith.constant 0 : i32
    %c0_i32_1 = arith.constant 0 : i32
    return %c0_i32, %c0_i32_0 : i32, i32
  }
  func.func @transform_2(%arg0: i32) -> (i32, i32) {
    %c0_i32 = arith.constant 0 : i32
    %c0_i32_0 = arith.constant 0 : i32
    return %arg0, %c0_i32 : i32, i32
  }
}

</mosaic_0001>

<bundles_post_ra>
// kernel: con_forward.1
= control target key start
LH: loop header
LB: loop body
LE: loop exit
PB: predicated region body
PF: predicated region fallthrough
CT: control target
= control target key end

     0   :  { %v298_v3 = vmov 0.0|0.0   ;;  %vm299_vm0 = vmmov 0   ;;  %v300_v4 = vmov 0.0   ;;  %vm55_vm1 = vcmask 261120   ;;  %s439_s1 = inlined_call_operand.vmem [shape: f32[296,128], index: 1, kind: input, shape index: {}]   ;;  %s440_s0 = inlined_call_operand.vmem [shape: f32[8,288], index: 0, kind: input, shape index: {}]   ;;  %s441_s2 = inlined_call_operand.vmem [shape: f32[8,128], index: 2, kind: output, shape index: {}]  }
   0x1   :  { %v30_v0 = vld [vmem:[%s439_s1 + $0x80] sm:$0xff]  ;;  %v31_v1 = vld [vmem:[%s439_s1 + $0x88] sm:$0xff]  ;;  %289 = vmatprep.subr.bf16.mxu1 %v298_v3  ;;  %254 = vmatprep.mubr.msk.f32.mxu1 %vm299_vm0, %v300_v4  ;;  %v32_v7 = vld [vmem:[%s439_s1 + $0x90] sm:$0xff] }
   0x2   :  { %v14_v2 = vld [vmem:[%s439_s1] sm:$0xff]  ;;  %v257_v5 = vpack.c.bf16 %v31_v1, %v30_v0  ;;  %v15_v6 = vld [vmem:[%s439_s1 + $0x8] sm:$0xff]  ;;  %v33_v8 = vld [vmem:[%s439_s1 + $0x98] sm:$0xff] }
   0x3   :  { %v259_v9 = vpack.c.bf16 %v15_v6, %v14_v2  ;;  %v261_v10 = vpack.c.bf16 %v33_v8, %v32_v7  ;;  %v16_v11 = vld [vmem:[%s439_s1 + $0x10] sm:$0xff]  ;;  %v17_v12 = vld [vmem:[%s439_s1 + $0x18] sm:$0xff]  ;;  %v34_v13 = vld [vmem:[%s439_s1 + $0xa0] sm:$0xff] }
   0x4   :  { %258 = vmatprep.subr.bf16.mxu0 %v257_v5  ;;  %v35_v14 = vld [vmem:[%s439_s1 + $0xa8] sm:$0xff]  ;;  %v263_v15 = vpack.c.bf16 %v17_v12, %v16_v11  ;;  %v18_v17 = vld [vmem:[%s439_s1 + $0x20] sm:$0xff]  ;;  %v36_v19 = vld [vmem:[%s439_s1 + $0xb0] sm:$0xff] }
   0x5   :  { %260 = vmatpush3.bf16.msra.mxu0 %v259_v9  ;;  %v265_v16 = vpack.c.bf16 %v35_v14, %v34_v13  ;;  %v19_v18 = vld [vmem:[%s439_s1 + $0x28] sm:$0xff]  ;;  %v37_v20 = vld [vmem:[%s439_s1 + $0xb8] sm:$0xff]  ;;  %v20_v23 = vld [vmem:[%s439_s1 + $0x30] sm:$0xff] }
   0x6   :  { %262 = vmatprep.subr.bf16.mxu0 %v261_v10  ;;  %v267_v21 = vpack.c.bf16 %v19_v18, %v18_v17  ;;  %v269_v22 = vpack.c.bf16 %v37_v20, %v36_v19  ;;  %v21_v24 = vld [vmem:[%s439_s1 + $0x38] sm:$0xff]  ;;  %v38_v25 = vld [vmem:[%s439_s1 + $0xc0] sm:$0xff]  ;;  %v39_v26 = vld [vmem:[%s439_s1 + $0xc8] sm:$0xff] }
   0x7   :  { %v46_v27 = vld [vmem:[%s439_s1 + $0x100] sm:$0xff]  ;;  %v47_v28 = vld [vmem:[%s439_s1 + $0x108] sm:$0xff]  ;;  %v271_v30 = vpack.c.bf16 %v21_v24, %v20_v23  ;;  %v48_v32 = vld [vmem:[%s439_s1 + $0x110] sm:$0xff]  ;;  %v273_v34 = vpack.c.bf16 %v39_v26, %v38_v25 }
   0x8   :  { %v12_v29 = vld [vmem:[%s440_s0 + $0x8] sm:$0xff]  ;;  %v290_v31 = vpack.c.bf16 %v47_v28, %v46_v27  ;;  %v49_v33 = vld [vmem:[%s439_s1 + $0x118] sm:$0xff]  ;;  %v22_v35 = vld [vmem:[%s439_s1 + $0x40] sm:$0xff] }
   0x9   :  { %264 = vmatpush3.bf16.msra.mxu0 %v263_v15  ;;  %123 = vmatprep.mubr.f32.mxu0 %v12_v29  ;;  %v23_v36 = vld [vmem:[%s439_s1 + $0x48] sm:$0xff]  ;;  %v40_v37 = vld [vmem:[%s439_s1 + $0xd0] sm:$0xff]  ;;  %v41_v38 = vld [vmem:[%s439_s1 + $0xd8] sm:$0xff]  ;;  %v293_v39 = vpack.c.bf16 %v49_v33, %v48_v32 }
   0xa   :  { %266 = vmatprep.subr.bf16.mxu0 %v265_v16  ;;  %291 = vmatpush3.bf16.msra.mxu1 %v290_v31  ;;  %v275_v40 = vpack.c.bf16 %v23_v36, %v22_v35  ;;  %v277_v41 = vpack.c.bf16 %v41_v38, %v40_v37  ;;  %v24_v42 = vld [vmem:[%s439_s1 + $0x50] sm:$0xff]  ;;  %v25_v43 = vld [vmem:[%s439_s1 + $0x58] sm:$0xff]  ;;  %v42_v44 = vld [vmem:[%s439_s1 + $0xe0] sm:$0xff] }
   0xb   :  { %292 = vmatprep.subr.bf16.mxu1 %v298_v3  ;;  %v43_v45 = vld [vmem:[%s439_s1 + $0xe8] sm:$0xff]  ;;  %v13_v46 = vld [vmem:[%s440_s0 + $0x10] sm:$0xff]  ;;  %v279_v47 = vpack.c.bf16 %v25_v43, %v24_v42  ;;  %v26_v49 = vld [vmem:[%s439_s1 + $0x60] sm:$0xff] }
   0xc   :  { %v281_v48 = vpack.c.bf16 %v43_v45, %v42_v44  ;;  %v27_v50 = vld [vmem:[%s439_s1 + $0x68] sm:$0xff]  ;;  %v44_v51 = vld [vmem:[%s439_s1 + $0xf0] sm:$0xff]  ;;  %v45_v52 = vld [vmem:[%s439_s1 + $0xf8] sm:$0xff] }
   0xd   :  { %268 = vmatpush3.bf16.msra.mxu0 %v267_v21  ;;  %v283_v53 = vpack.c.bf16 %v27_v50, %v26_v49  ;;  %v285_v54 = vpack.c.bf16 %v45_v52, %v44_v51  ;;  %v28_v55 = vld [vmem:[%s439_s1 + $0x70] sm:$0xff]  ;;  %v29_v56 = vld [vmem:[%s439_s1 + $0x78] sm:$0xff]  ;;  %v11_v58 = vld [vmem:[%s440_s0] sm:$0xff] }
   0xe   :  { %270 = vmatprep.subr.bf16.mxu0 %v269_v22  ;;  %294 = vmatpush3.bf16.msra.mxu1 %v293_v39  ;;  %v287_v57 = vpack.c.bf16 %v29_v56, %v28_v55  ;;  %v204_v63 = vld [vmem:[%s439_s1 + $0x120] ss:$0 sm:$0xff] }
  0x11   :  { %272 = vmatpush3.bf16.msra.mxu0 %v271_v30  ;;  %255 = vmatmul.mubr.msk.f32.vlgmr.msra.gmra.mrb[0].mxu1 %vm55_vm1, %v13_v46 }
  0x12   :  { %274 = vmatprep.subr.bf16.mxu0 %v273_v34 }
  0x15   :  { %276 = vmatpush3.bf16.msra.mxu0 %v275_v40 }
  0x16   :  { %278 = vmatprep.subr.bf16.mxu0 %v277_v41 }
  0x19   :  { %280 = vmatpush3.bf16.msra.mxu0 %v279_v47 }
  0x1a   :  { %282 = vmatprep.subr.bf16.mxu0 %v281_v48 }
  0x1d   :  { %284 = vmatpush3.bf16.msra.mxu0 %v283_v53 }
  0x1e   :  { %286 = vmatprep.subr.bf16.mxu0 %v285_v54 }
  0x21   :  { %288 = vmatpush3.bf16.msra.mxu0 %v287_v57 }
  0x24   :  { %124 = vmatmul.mubr.f32.vlgmr.msra.gmra.mrb[0].mxu0 %v11_v58 }
  0xe4   :  { %v195_v59 = vpop.f32.mrb[0].mxu1 }
  0xe5   :  { %v256_v60 = vpop.f32.mrb[1].mxu1 }
  0xf7   :  { %v238_v61 = vpop.f32.mrb[0].mxu0 }
  0xf8   :  { %v239_v62 = vpop.f32.mrb[1].mxu0 }
  0xf9   :  { %v240_v0 = vadd.f32 %v239_v62, %v238_v61 }
  0xfb   :  { %v126_v1 = vadd.f32 %v240_v0, %v204_v63 }
  0xfd   :  { %v196_v2 = vadd.f32 %v195_v59, %v126_v1 }
  0xff   :  { %199 = vst [vmem:[%s441_s2] sm:$0xff] %v196_v2 }

</bundles_post_ra>
